<compile_context>
chip_gen: v7x
topology: tpu7x:2x2x1
jax: 0.10.0
libtpu: 0.0.40
codegen_flags: <defaults>
</compile_context>

<pallas_src>
import functools

import jax
import jax.numpy as jnp
from jax.experimental import pallas as pl


def dummy_model_kernel(x_ref, sel_ref, w1, b1, w2, b2, w3, b3, w4p, b4p, out_ref):
    """Single-step kernel; the whole (tiny) problem is resident in VMEM.

    x_ref:   [B*A*N, 3]    flattened positions, row order (b, a, n), n fastest
    sel_ref: [A*B, B*A*N]  constant segment-sum matrix, output row k = a*B + b
    w4p/b4p: Linear(2->2) zero-padded to 128 output lanes
    out_ref: [A*B, 128]    lane-dense output; real actions live in [:, :2]
    """
    x = x_ref[...]
    # MLP: Linear(3->128)+Tanh, Linear(128->128)+Tanh, Linear(128->2)+Tanh
    h = jnp.tanh(jnp.dot(x, w1[...], preferred_element_type=jnp.float32) + b1[...])
    h = jnp.tanh(jnp.dot(h, w2[...], preferred_element_type=jnp.float32) + b2[...])
    f = jnp.tanh(jnp.dot(h, w3[...], preferred_element_type=jnp.float32) + b3[...])  # [B*A*N, 2]

    # torch.sum(features, 1): per-(agent, batch) segment sum over N, one MXU pass.
    fs = jnp.dot(sel_ref[...], f, preferred_element_type=jnp.float32)                # [A*B, 2]

    # out_put: Linear(2->2), lane-padded to 128 => single unmasked store.
    out_ref[...] = jnp.dot(fs, w4p[...], preferred_element_type=jnp.float32) + b4p[...]


def init_params(key):
    """Deterministic PyTorch-Linear-style init (uniform ±1/sqrt(fan_in))."""
    ks = jax.random.split(key, 8)

    def lin(kw, kb, fan_in, fan_out):
        bound = 1.0 / float(fan_in) ** 0.5
        w = jax.random.uniform(kw, (fan_in, fan_out), jnp.float32, -bound, bound)
        b = jax.random.uniform(kb, (1, fan_out), jnp.float32, -bound, bound)
        return w, b

    w1, b1 = lin(ks[0], ks[1], 3, 128)
    w2, b2 = lin(ks[2], ks[3], 128, 128)
    w3, b3 = lin(ks[4], ks[5], 128, 2)
    w4, b4 = lin(ks[6], ks[7], 2, 2)
    return (w1, b1, w2, b2, w3, b3, w4, b4)


@functools.partial(jax.jit, static_argnames=("number_of_agent",))
def dummy_model_forward(x, params, *, number_of_agent=3):
    """x: [B, A, N, 3] float32.

    Returns a stacked [A, B, 2] array; result[a] == PyTorch action_predict[a].
    """
    B, A, N, F = x.shape
    assert A == number_of_agent

    w1, b1, w2, b2, w3, b3, w4, b4 = params

    # Pure reshape of the contiguous [B, A, N, 3] array — no transpose, no copy.
    xk = x.reshape(B * A * N, F).astype(jnp.float32)

    # Constant selection matrix for the segment sum, built at trace time.
    # Flattened row r = b*A*N + a*N + n  ->  output row k = a*B + b.
    r = jnp.arange(B * A * N)
    seg = ((r // N) % A) * B + (r // (A * N))
    sel = (seg[None, :] == jnp.arange(A * B)[:, None]).astype(jnp.float32)  # [A*B, B*A*N]

    # Zero-pad the final Linear(2->2) to 128 output lanes (lane-dense store);
    # padded lanes stay exactly zero (zero weights + zero bias).
    w4p = jnp.zeros((2, 128), jnp.float32).at[:, :2].set(w4)
    b4p = jnp.zeros((1, 128), jnp.float32).at[:, :2].set(b4)

    # Single kernel invocation, whole arrays resident in VMEM (no grid needed:
    # weights ~68 KB + activations a few KB, far under any VMEM limit).
    out = pl.pallas_call(
        dummy_model_kernel,
        out_shape=jax.ShapeDtypeStruct((A * B, 128), jnp.float32),
    )(xk, sel, w1, b1, w2, b2, w3, b3, w4p, b4p)

    return out[:, :2].reshape(A, B, 2)


if __name__ == "__main__":
    key = jax.random.PRNGKey(0)
    k_x, k_p = jax.random.split(key)

    B, A, N, F = 2, 3, 8, 3           # batch=2, agents=3, points-per-agent=8, xyz=3
    x = jax.random.normal(k_x, (B, A, N, F), dtype=jnp.float32)
    params = init_params(k_p)

    actions = dummy_model_forward(x, params, number_of_agent=A)
    actions = jax.block_until_ready(actions)
    assert actions.shape == (A, B, 2)

    # Pure-JAX float32 reference (same semantics as the PyTorch forward).
    w1, b1, w2, b2, w3, b3, w4, b4 = params
    h = jnp.tanh(x @ w1 + b1)
    h = jnp.tanh(h @ w2 + b2)
    f = jnp.tanh(h @ w3 + b3)                      # [B, A, N, 2]
    fs = jnp.sum(f, axis=2)                        # [B, A, 2]  (torch.sum(features, 1))
    ref = jnp.transpose(fs @ w4 + b4, (1, 0, 2))   # [A, B, 2]
    max_err = float(jnp.max(jnp.abs(actions - ref)))
    assert max_err < 2e-3, f"kernel/reference mismatch: max abs err {max_err}"

    print("KERNEL_OK")
</pallas_src>

<mosaic_0001>
module attributes {stable_mosaic.version = 11 : i64} {
  func.func @dummy_model_kernel(%arg0: memref<48x3xf32, #tpu.memory_space<vmem>>, %arg1: memref<6x48xf32, #tpu.memory_space<vmem>>, %arg2: memref<3x128xf32, #tpu.memory_space<vmem>>, %arg3: memref<1x128xf32, #tpu.memory_space<vmem>>, %arg4: memref<128x128xf32, #tpu.memory_space<vmem>>, %arg5: memref<1x128xf32, #tpu.memory_space<vmem>>, %arg6: memref<128x2xf32, #tpu.memory_space<vmem>>, %arg7: memref<1x2xf32, #tpu.memory_space<vmem>>, %arg8: memref<2x128xf32, #tpu.memory_space<vmem>>, %arg9: memref<1x128xf32, #tpu.memory_space<vmem>>, %arg10: memref<6x128xf32, #tpu.memory_space<vmem>>) attributes {dimension_semantics = [], scalar_prefetch = 0 : i64, scratch_operands = 0 : i64, tpu.core_type = #tpu.core_type<tc>} {
    %c0 = arith.constant 0 : index
    %c0_0 = arith.constant 0 : index
    %0 = vector.load %arg0[%c0, %c0_0] : memref<48x3xf32, #tpu.memory_space<vmem>>, vector<48x3xf32>
    %c0_1 = arith.constant 0 : index
    %c0_2 = arith.constant 0 : index
    %1 = vector.load %arg2[%c0_1, %c0_2] : memref<3x128xf32, #tpu.memory_space<vmem>>, vector<3x128xf32>
    %cst = arith.constant dense<0.000000e+00> : vector<48x128xf32>
    %2 = tpu.matmul %0, %1, %cst {dimension_numbers = #tpu.dot_dimension_numbers<[1], [0], [0], [1], [0, 0, 1, 1], [], []>} : vector<48x3xf32>, vector<3x128xf32>, vector<48x128xf32> -> vector<48x128xf32>
    %c0_3 = arith.constant 0 : index
    %c0_4 = arith.constant 0 : index
    %3 = vector.load %arg3[%c0_3, %c0_4] : memref<1x128xf32, #tpu.memory_space<vmem>>, vector<1x128xf32>
    %4 = vector.broadcast %3 : vector<1x128xf32> to vector<48x128xf32>
    %5 = arith.addf %2, %4 : vector<48x128xf32>
    %6 = math.tanh %5 : vector<48x128xf32>
    %c0_5 = arith.constant 0 : index
    %c0_6 = arith.constant 0 : index
    %7 = vector.load %arg4[%c0_5, %c0_6] : memref<128x128xf32, #tpu.memory_space<vmem>>, vector<128x128xf32>
    %cst_7 = arith.constant dense<0.000000e+00> : vector<48x128xf32>
    %8 = tpu.matmul %6, %7, %cst_7 {dimension_numbers = #tpu.dot_dimension_numbers<[1], [0], [0], [1], [0, 0, 1, 1], [], []>} : vector<48x128xf32>, vector<128x128xf32>, vector<48x128xf32> -> vector<48x128xf32>
    %c0_8 = arith.constant 0 : index
    %c0_9 = arith.constant 0 : index
    %9 = vector.load %arg5[%c0_8, %c0_9] : memref<1x128xf32, #tpu.memory_space<vmem>>, vector<1x128xf32>
    %10 = vector.broadcast %9 : vector<1x128xf32> to vector<48x128xf32>
    %11 = arith.addf %8, %10 : vector<48x128xf32>
    %12 = math.tanh %11 : vector<48x128xf32>
    %c0_10 = arith.constant 0 : index
    %c0_11 = arith.constant 0 : index
    %13 = vector.load %arg6[%c0_10, %c0_11] : memref<128x2xf32, #tpu.memory_space<vmem>>, vector<128x2xf32>
    %cst_12 = arith.constant dense<0.000000e+00> : vector<48x2xf32>
    %14 = tpu.matmul %12, %13, %cst_12 {dimension_numbers = #tpu.dot_dimension_numbers<[1], [0], [0], [1], [0, 0, 1, 1], [], []>} : vector<48x128xf32>, vector<128x2xf32>, vector<48x2xf32> -> vector<48x2xf32>
    %c0_13 = arith.constant 0 : index
    %c0_14 = arith.constant 0 : index
    %15 = vector.load %arg7[%c0_13, %c0_14] : memref<1x2xf32, #tpu.memory_space<vmem>>, vector<1x2xf32>
    %16 = vector.broadcast %15 : vector<1x2xf32> to vector<48x2xf32>
    %17 = arith.addf %14, %16 : vector<48x2xf32>
    %18 = math.tanh %17 : vector<48x2xf32>
    %c0_15 = arith.constant 0 : index
    %c0_16 = arith.constant 0 : index
    %19 = vector.load %arg1[%c0_15, %c0_16] : memref<6x48xf32, #tpu.memory_space<vmem>>, vector<6x48xf32>
    %cst_17 = arith.constant dense<0.000000e+00> : vector<6x2xf32>
    %20 = tpu.matmul %19, %18, %cst_17 {dimension_numbers = #tpu.dot_dimension_numbers<[1], [0], [0], [1], [0, 0, 1, 1], [], []>} : vector<6x48xf32>, vector<48x2xf32>, vector<6x2xf32> -> vector<6x2xf32>
    %c0_18 = arith.constant 0 : index
    %c0_19 = arith.constant 0 : index
    %21 = vector.load %arg8[%c0_18, %c0_19] : memref<2x128xf32, #tpu.memory_space<vmem>>, vector<2x128xf32>
    %cst_20 = arith.constant dense<0.000000e+00> : vector<6x128xf32>
    %22 = tpu.matmul %20, %21, %cst_20 {dimension_numbers = #tpu.dot_dimension_numbers<[1], [0], [0], [1], [0, 0, 1, 1], [], []>} : vector<6x2xf32>, vector<2x128xf32>, vector<6x128xf32> -> vector<6x128xf32>
    %c0_21 = arith.constant 0 : index
    %c0_22 = arith.constant 0 : index
    %23 = vector.load %arg9[%c0_21, %c0_22] : memref<1x128xf32, #tpu.memory_space<vmem>>, vector<1x128xf32>
    %24 = vector.broadcast %23 : vector<1x128xf32> to vector<6x128xf32>
    %25 = arith.addf %22, %24 : vector<6x128xf32>
    %c0_23 = arith.constant 0 : index
    %c0_24 = arith.constant 0 : index
    %26 = vector.load %arg10[%c0_23, %c0_24] : memref<6x128xf32, #tpu.memory_space<vmem>>, vector<6x128xf32>
    tpu.vector_store %arg10[%c0_23, %c0_24], %25 {strides = array<i32>} : memref<6x128xf32, #tpu.memory_space<vmem>>, vector<6x128xf32>,
    return
  }
}

</mosaic_0001>

<bundles_post_ra>
// kernel: dummy_model_forward.1
= control target key start
LH: loop header
LB: loop body
LE: loop exit
PB: predicated region body
PF: predicated region fallthrough
CT: control target
= control target key end

     0   :  { %vm68_vm0 = vcmask 1042432   ;;  %vm49_vm1 = vcmask 23552   ;;  %vm887_vm2 = vmmov 0   ;;  %vm508_vm3 = vcmask 1041408   ;;  %s1088_s2 = inlined_call_operand.vmem [shape: f32[3,128], index: 2, kind: input, shape index: {}]   ;;  %s1089_s0 = inlined_call_operand.vmem [shape: f32[48,3], index: 0, kind: input, shape index: {}]   ;;  %s1090_s4 = inlined_call_operand.vmem [shape: f32[128,128], index: 4, kind: input, shape index: {}]   ;;  %s1091_s6 = inlined_call_operand.vmem [shape: f32[128,2], index: 6, kind: input, shape index: {}]   ;;  %s1092_s3 = inlined_call_operand.vmem [shape: f32[1,128], index: 3, kind: input, shape index: {}]   ;;  %s1093_s5 = inlined_call_operand.vmem [shape: f32[1,128], index: 5, kind: input, shape index: {}]   ;;  %s1094_s8 = inlined_call_operand.vmem [shape: f32[2,128], index: 8, kind: input, shape index: {}]   ;;  %s1095_s7 = inlined_call_operand.vmem [shape: f32[1,2], index: 7, kind: input, shape index: {}]   ;;  %s1096_s1 = inlined_call_operand.vmem [shape: f32[6,48], index: 1, kind: input, shape index: {}]   ;;  %s1097_s9 = inlined_call_operand.vmem [shape: f32[1,128], index: 9, kind: input, shape index: {}]   ;;  %s1098_s10 = inlined_call_operand.vmem [shape: f32[6,128], index: 10, kind: output, shape index: {}]  }
   0x1   :  { %v41_v0 = vld [vmem:[%s1088_s2] sm:$0x7]  ;;  %v36_v2 = vld [vmem:[%s1089_s0 + $0x8] sm:$0xff]  ;;  %v37_v3 = vld [vmem:[%s1089_s0 + $0x10] sm:$0xff]  ;;  %vm422_vm4 = vcmask 392192   ;;  %vm504_vm5 = vcmask 15360  }
   0x2   :  { %v35_v1 = vld [vmem:[%s1089_s0] sm:$0xff]  ;;  %661 = vmatprep.subr.msk.mxu0 %vm68_vm0, %v41_v0  ;;  %v174_v5 = vld [vmem:[%s1090_s4 + $0x8] sm:$0xff]  ;;  %v175_v7 = vld [vmem:[%s1090_s4 + $0x10] sm:$0xff] }
   0x3   :  { %663 = vmatprep.mubr.msk.f32.mxu0 %vm49_vm1, %v35_v1  ;;  %662 = vmatpush3.msk.msra.mxu0 %vm68_vm0, %v41_v0  ;;  %v173_v4 = vld [vmem:[%s1090_s4] sm:$0xff]  ;;  %v176_v8 = vld [vmem:[%s1090_s4 + $0x18] sm:$0xff]  ;;  %v178_v12 = vld [vmem:[%s1090_s4 + $0x28] sm:$0xff] }
   0x4   :  { %664 = vmatmul.mubr.msk.f32.vlgmr.msra.gmra.mrb[0].mxu0 %vm49_vm1, %v36_v2  ;;  %v774_v6 = vpack.c.bf16 %v174_v5, %v173_v4  ;;  %v38_v9 = vld [vmem:[%s1089_s0 + $0x18] sm:$0xff]  ;;  %v778_v10 = vpack.c.bf16 %v176_v8, %v175_v7  ;;  %v177_v11 = vld [vmem:[%s1090_s4 + $0x20] sm:$0xff]  ;;  %v40_v15 = vld [vmem:[%s1089_s0 + $0x28] sm:$0xff] }
   0x5   :  { %666 = vmatprep.mubr.msk.f32.mxu0 %vm49_vm1, %v37_v3  ;;  %v39_v13 = vld [vmem:[%s1089_s0 + $0x20] sm:$0xff]  ;;  %v782_v14 = vpack.c.bf16 %v178_v12, %v177_v11  ;;  %v179_v16 = vld [vmem:[%s1090_s4 + $0x30] sm:$0xff]  ;;  %v180_v17 = vld [vmem:[%s1090_s4 + $0x38] sm:$0xff] }
   0x6   :  { %775 = vmatprep.subr.bf16.mxu1 %v774_v6  ;;  %v786_v18 = vpack.c.bf16 %v180_v17, %v179_v16  ;;  %v181_v19 = vld [vmem:[%s1090_s4 + $0x40] sm:$0xff]  ;;  %v182_v20 = vld [vmem:[%s1090_s4 + $0x48] sm:$0xff]  ;;  %v183_v22 = vld [vmem:[%s1090_s4 + $0x50] sm:$0xff] }
   0x7   :  { %777 = vmatpush3.bf16.msra.mxu1 %v774_v6  ;;  %v790_v21 = vpack.c.bf16 %v182_v20, %v181_v19  ;;  %v184_v23 = vld [vmem:[%s1090_s4 + $0x58] sm:$0xff]  ;;  %v185_v25 = vld [vmem:[%s1090_s4 + $0x60] sm:$0xff]  ;;  %v186_v26 = vld [vmem:[%s1090_s4 + $0x68] sm:$0xff] }
   0x8   :  { %667 = vmatmul.mubr.msk.f32.gmra.mrb[2].mxu0 %vm49_vm1, %v38_v9  ;;  %779 = vmatprep.subr.bf16.mxu1 %v778_v10  ;;  %v794_v24 = vpack.c.bf16 %v184_v23, %v183_v22  ;;  %v798_v27 = vpack.c.bf16 %v186_v26, %v185_v25  ;;  %v187_v28 = vld [vmem:[%s1090_s4 + $0x70] sm:$0xff]  ;;  %v188_v29 = vld [vmem:[%s1090_s4 + $0x78] sm:$0xff]  ;;  %v297_v31 = vld [vmem:[%s1091_s6] sm:$0xff] }
   0x9   :  { %669 = vmatprep.mubr.msk.f32.mxu0 %vm49_vm1, %v39_v13  ;;  %v802_v30 = vpack.c.bf16 %v188_v29, %v187_v28  ;;  %v298_v32 = vld [vmem:[%s1091_s6 + $0x8] sm:$0xff]  ;;  %v299_v33 = vld [vmem:[%s1091_s6 + $0x10] sm:$0xff]  ;;  %v300_v35 = vld [vmem:[%s1091_s6 + $0x18] sm:$0xff]  ;;  %v886_v29 = vmov 0.0|0.0  }
   0xa   :  { %v806_v34 = vpack.c.bf16 %v298_v32, %v297_v31  ;;  %v810_v36 = vpack.c.bf16 %v300_v35, %v299_v33  ;;  %v301_v37 = vld [vmem:[%s1091_s6 + $0x20] sm:$0xff]  ;;  %v302_v38 = vld [vmem:[%s1091_s6 + $0x28] sm:$0xff]  ;;  %v303_v40 = vld [vmem:[%s1091_s6 + $0x30] sm:$0xff] }
   0xb   :  { %781 = vmatpush3.bf16.msra.mxu1 %v778_v10  ;;  %v814_v39 = vpack.c.bf16 %v302_v38, %v301_v37  ;;  %v304_v41 = vld [vmem:[%s1091_s6 + $0x38] sm:$0xff]  ;;  %v587_v43 = vld [vmem:[%s1092_s3] ss:$0 sm:$0xff]  ;;  %v306_v63 = vld [vmem:[%s1091_s6 + $0x48] sm:$0xff] }
   0xc   :  { %670 = vmatmul.mubr.msk.f32.gmra.mrb[4].mxu0 %vm49_vm1, %v40_v15  ;;  %783 = vmatprep.subr.bf16.mxu1 %v782_v14  ;;  %v818_v42 = vpack.c.bf16 %v304_v41, %v303_v40  ;;  %v305_v62 = vld [vmem:[%s1091_s6 + $0x40] sm:$0xff]  ;;  %v307_v1 = vld [vmem:[%s1091_s6 + $0x50] sm:$0xff]  ;;  %v308_v2 = vld [vmem:[%s1091_s6 + $0x58] sm:$0xff] }
   0xd   :  { %807 = vmatprep.subr.bf16.mxu0 %v806_v34  ;;  %v822_v0 = vpack.c.bf16 %v306_v63, %v305_v62  ;;  %v826_v3 = vpack.c.bf16 %v308_v2, %v307_v1  ;;  %v309_v4 = vld [vmem:[%s1091_s6 + $0x60] sm:$0xff]  ;;  %v310_v5 = vld [vmem:[%s1091_s6 + $0x68] sm:$0xff]  ;;  %v311_v7 = vld [vmem:[%s1091_s6 + $0x70] sm:$0xff] }
   0xe   :  { %809 = vmatpush3.bf16.msra.mxu0 %v806_v34  ;;  %v830_v6 = vpack.c.bf16 %v310_v5, %v309_v4  ;;  %v312_v8 = vld [vmem:[%s1091_s6 + $0x78] sm:$0xff]  ;;  %v595_v10 = vld [vmem:[%s1093_s5] ss:$0 sm:$0xff] }
   0xf   :  { %785 = vmatpush3.bf16.msra.mxu1 %v782_v14  ;;  %811 = vmatprep.subr.bf16.mxu0 %v810_v36  ;;  %v834_v9 = vpack.c.bf16 %v312_v8, %v311_v7  ;;  %v496_v31 = vld [vmem:[%s1094_s8] sm:$0x3] }
  0x10   :  { %787 = vmatprep.subr.bf16.mxu1 %v786_v18  ;;  %v596_v32 = vld [vmem:[%s1095_s7] ss:$0 sm:$0xff] }
  0x12   :  { %813 = vmatpush3.bf16.msra.mxu0 %v810_v36 }
  0x13   :  { %789 = vmatpush3.bf16.msra.mxu1 %v786_v18  ;;  %815 = vmatprep.subr.bf16.mxu0 %v814_v39 }
  0x14   :  { %791 = vmatprep.subr.bf16.mxu1 %v790_v21 }
  0x16   :  { %817 = vmatpush3.bf16.msra.mxu0 %v814_v39 }
  0x17   :  { %793 = vmatpush3.bf16.msra.mxu1 %v790_v21  ;;  %819 = vmatprep.subr.bf16.mxu0 %v818_v42 }
  0x18   :  { %795 = vmatprep.subr.bf16.mxu1 %v794_v24 }
  0x1a   :  { %821 = vmatpush3.bf16.msra.mxu0 %v818_v42 }
  0x1b   :  { %797 = vmatpush3.bf16.msra.mxu1 %v794_v24  ;;  %823 = vmatprep.subr.bf16.mxu0 %v822_v0 }
  0x1c   :  { %799 = vmatprep.subr.bf16.mxu1 %v798_v27 }
  0x1e   :  { %825 = vmatpush3.bf16.msra.mxu0 %v822_v0 }
  0x1f   :  { %801 = vmatpush3.bf16.msra.mxu1 %v798_v27  ;;  %827 = vmatprep.subr.bf16.mxu0 %v826_v3 }
  0x20   :  { %803 = vmatprep.subr.bf16.mxu1 %v802_v30 }
  0x22   :  { %829 = vmatpush3.bf16.msra.mxu0 %v826_v3 }
  0x23   :  { %805 = vmatpush3.bf16.msra.mxu1 %v802_v30  ;;  %831 = vmatprep.subr.bf16.mxu0 %v830_v6  ;;  %v888_v30 = vmov 0.0  }
  0x24   :  { %838 = vmatprep.subr.bf16.mxu1 %v886_v29 }
  0x26   :  { %833 = vmatpush3.bf16.msra.mxu0 %v830_v6 }
  0x27   :  { %835 = vmatprep.subr.bf16.mxu0 %v834_v9 }
  0x2a   :  { %837 = vmatpush3.bf16.msra.mxu0 %v834_v9 }
  0x2b   :  { %769 = vmatprep.subr.mxu0 %v888_v30 }
  0xd7   :  { %v665_v44 = vpop.f32.mrb[0].mxu0 }
  0xd8   :  { %v144_v45 = vadd.f32 %v665_v44, %v587_v43  ;;  %v138_v46 = vpop.f32.mrb[1].mxu0 }
  0xd9   :  { %v139_v47 = vadd.f32 %v587_v43, %v138_v46 }
  0xdb   :  { %850 = vtanh.f32 %v139_v47  ;;  %v668_v48 = vpop.f32.mrb[2].mxu0 }
  0xdc   :  { %852 = vtanh.f32 %v144_v45  ;;  %v154_v49 = vadd.f32 %v668_v48, %v587_v43  ;;  %v148_v50 = vpop.f32.mrb[3].mxu0 }
  0xdd   :  { %v149_v51 = vadd.f32 %v587_v43, %v148_v50 }
  0xdf   :  { %854 = vtanh.f32 %v149_v51  ;;  %v671_v52 = vpop.f32.mrb[4].mxu0 }
  0xe0   :  { %856 = vtanh.f32 %v154_v49  ;;  %v164_v53 = vadd.f32 %v671_v52, %v587_v43  ;;  %v158_v54 = vpop.f32.mrb[5].mxu0 }
  0xe1   :  { %v159_v55 = vadd.f32 %v587_v43, %v158_v54  ;;  %v421_v54 = vld [vmem:[%s1096_s1] sm:$0x3f] }
  0xe3   :  { %858 = vtanh.f32 %v159_v55 }
  0xe4   :  { %860 = vtanh.f32 %v164_v53 }
  0xe5   :  { %v851_v56 = vpop.eup %850 }
  0xe6   :  { %v853_v57 = vpop.eup %852  ;;  %704 = vmatprep.mubr.f32.mxu1 %v851_v56 }
  0xe7   :  { %705 = vmatmul.mubr.f32.vlgmr.msra.gmra.mrb[0].mxu1 %v853_v57  ;;  %v598_v57 = vld [vmem:[%s1097_s9] ss:$0 sm:$0xff] }
  0xe9   :  { %v855_v58 = vpop.eup %854 }
  0xea   :  { %v857_v59 = vpop.eup %856  ;;  %707 = vmatprep.mubr.f32.mxu1 %v855_v58 }
  0xeb   :  { %708 = vmatmul.mubr.f32.gmra.mrb[2].mxu1 %v857_v59 }
  0xed   :  { %v859_v60 = vpop.eup %858 }
  0xee   :  { %v861_v61 = vpop.eup %860  ;;  %710 = vmatprep.mubr.f32.mxu1 %v859_v60 }
  0xef   :  { %711 = vmatmul.mubr.f32.gmra.mrb[4].mxu1 %v861_v61 }
  0xf0   :  { %766 = vmatprep.mubr.msk.f32.mxu1 %vm887_vm2, %v888_v30 }
 0x1ba   :  { %v706_v11 = vpop.f32.mrb[0].mxu1 }
 0x1bb   :  { %v268_v12 = vadd.f32 %v706_v11, %v595_v10  ;;  %v262_v13 = vpop.f32.mrb[1].mxu1 }
 0x1bc   :  { %v263_v14 = vadd.f32 %v595_v10, %v262_v13 }
 0x1be   :  { %862 = vtanh.f32 %v263_v14  ;;  %v709_v15 = vpop.f32.mrb[2].mxu1 }
 0x1bf   :  { %864 = vtanh.f32 %v268_v12  ;;  %v278_v16 = vadd.f32 %v709_v15, %v595_v10  ;;  %v272_v17 = vpop.f32.mrb[3].mxu1 }
 0x1c0   :  { %v273_v18 = vadd.f32 %v595_v10, %v272_v17 }
 0x1c2   :  { %866 = vtanh.f32 %v273_v18  ;;  %v712_v19 = vpop.f32.mrb[4].mxu1 }
 0x1c3   :  { %868 = vtanh.f32 %v278_v16  ;;  %v288_v20 = vadd.f32 %v712_v19, %v595_v10  ;;  %v282_v21 = vpop.f32.mrb[5].mxu1 }
 0x1c4   :  { %v283_v22 = vadd.f32 %v595_v10, %v282_v21 }
 0x1c6   :  { %870 = vtanh.f32 %v283_v22 }
 0x1c7   :  { %872 = vtanh.f32 %v288_v20 }
 0x1c8   :  { %v863_v23 = vpop.eup %862 }
 0x1c9   :  { %v865_v24 = vpop.eup %864  ;;  %745 = vmatprep.mubr.f32.mxu0 %v863_v23 }
 0x1ca   :  { %746 = vmatmul.mubr.f32.vlgmr.msra.gmra.mrb[6].mxu0 %v865_v24 }
 0x1cb   :  { %770 = vmatpush3.msk.msra.mxu0 %vm508_vm3, %v496_v31 }
 0x1cc   :  { %v867_v25 = vpop.eup %866 }
 0x1cd   :  { %v869_v26 = vpop.eup %868  ;;  %748 = vmatprep.mubr.f32.mxu0 %v867_v25 }
 0x1ce   :  { %749 = vmatmul.mubr.f32.gmra.mrb[8].mxu0 %v869_v26 }
 0x1d0   :  { %v871_v27 = vpop.eup %870 }
 0x1d1   :  { %v873_v28 = vpop.eup %872  ;;  %751 = vmatprep.mubr.f32.mxu0 %v871_v27 }
 0x1d2   :  { %752 = vmatmul.mubr.f32.gmra.mrb[10].mxu0 %v873_v28 }
 0x1d3   :  { %771 = vmatprep.mubr.msk.f32.mxu0 %vm887_vm2, %v888_v30 }
 0x29d   :  { %v747_v33 = vpop.f32.mrb[6].mxu0 }
 0x29e   :  { %v392_v34 = vadd.f32 %v747_v33, %v596_v32  ;;  %v386_v35 = vpop.f32.mrb[7].mxu0 }
 0x29f   :  { %v387_v36 = vadd.f32 %v596_v32, %v386_v35 }
 0x2a0   :  { %874 = vtanh.f32 %v392_v34 }
 0x2a1   :  { %876 = vtanh.f32 %v387_v36  ;;  %v750_v37 = vpop.f32.mrb[8].mxu0 }
 0x2a2   :  { %v402_v38 = vadd.f32 %v750_v37, %v596_v32  ;;  %v396_v39 = vpop.f32.mrb[9].mxu0 }
 0x2a3   :  { %v397_v40 = vadd.f32 %v596_v32, %v396_v39 }
 0x2a4   :  { %878 = vtanh.f32 %v402_v38 }
 0x2a5   :  { %880 = vtanh.f32 %v397_v40  ;;  %v753_v41 = vpop.f32.mrb[10].mxu0 }
 0x2a6   :  { %v412_v42 = vadd.f32 %v753_v41, %v596_v32  ;;  %v406_v43 = vpop.f32.mrb[11].mxu0 }
 0x2a7   :  { %v407_v44 = vadd.f32 %v596_v32, %v406_v43 }
 0x2a8   :  { %882 = vtanh.f32 %v412_v42 }
 0x2a9   :  { %884 = vtanh.f32 %v407_v44 }
 0x2aa   :  { %v875_v45 = vpop.eup %874 }
 0x2ab   :  { %v877_v46 = vpop.eup %876 }
 0x2ac   :  { %v839_v47 = vpack.c.bf16 %v875_v45, %v877_v46 }
 0x2ae   :  { %v879_v48 = vpop.eup %878  ;;  %840 = vmatpush3.bf16.msra.mxu1 %v839_v47 }
 0x2af   :  { %v881_v49 = vpop.eup %880  ;;  %841 = vmatprep.subr.bf16.mxu1 %v886_v29 }
 0x2b0   :  { %v842_v50 = vpack.c.bf16 %v879_v48, %v881_v49 }
 0x2b2   :  { %v883_v51 = vpop.eup %882  ;;  %843 = vmatpush3.bf16.msra.mxu1 %v842_v50 }
 0x2b3   :  { %v885_v52 = vpop.eup %884  ;;  %844 = vmatprep.subr.bf16.mxu1 %v886_v29 }
 0x2b4   :  { %v845_v53 = vpack.c.bf16 %v883_v51, %v885_v52 }
 0x2b6   :  { %846 = vmatpush3.bf16.msra.mxu1 %v845_v53 }
 0x2b9   :  { %767 = vmatmul.mubr.msk.f32.vlgmr.msra.gmra.mrb[6].mxu1 %vm422_vm4, %v421_v54 }
 0x38c   :  { %v492_v55 = vpop.f32.mrb[6].mxu1 }
 0x38d   :  { %v768_v56 = vpop.f32.mrb[7].mxu1  ;;  %772 = vmatmul.mubr.msk.f32.vlgmr.msra.gmra.mrb[12].mxu0 %vm504_vm5, %v492_v55 }
 0x460   :  { %v578_v58 = vpop.f32.mrb[12].mxu0 }
 0x461   :  { %v579_v59 = vadd.f32 %v598_v57, %v578_v58  ;;  %v773_v60 = vpop.f32.mrb[13].mxu0 }
 0x463   :  { %582 = vst [vmem:[%s1098_s10] sm:$0x3f] %v579_v59 }

</bundles_post_ra>
